<compile_context>
chip_gen: v5e
topology: v5e:2x2
jax: 0.10.0
libtpu: 0.0.40
codegen_flags: <defaults>
</compile_context>

<pallas_src>
import functools

import jax
import jax.numpy as jnp
from jax.experimental import pallas as pl
from jax.experimental.pallas import tpu as pltpu


def _fused_kernel(x_ref, wc_ref, w0_ref, b_ref, out_ref, *, width):
    """x_ref: (C, Xpad) padded flat image; wc_ref: (K, C) = conv weight / 9;
    w0_ref: (K, C) = conv0 weight; b_ref: (K, 1) = bc + b0; out_ref: (K, Lpad)."""
    K, Lpad = out_ref.shape

    x = x_ref[...]                                            # (C, Xpad)

    # Separable 3x3 stride-1 sum-pool in the flat domain:
    #   horizontal 3-tap sum once, then vertical 3-tap sum of W-shifted views.
    Lh = Lpad + 2 * width
    h = x[:, 0:Lh] + x[:, 1:1 + Lh] + x[:, 2:2 + Lh]          # (C, Lh)
    acc = (h[:, 0:Lpad]
           + h[:, width:width + Lpad]
           + h[:, 2 * width:2 * width + Lpad])                # (C, Lpad) un-normalised

    # conv0 input: x centre-cropped by 1 pixel -> flat offset (width + 1).
    x_crop = x[:, width + 1:width + 1 + Lpad]                 # (C, Lpad)

    # Two small MXU pushes summed in f32 (no concat copy):
    #   v3 = (wc/9) @ acc + w0 @ x_crop + (bc + b0)  ==  v2 + t1
    v3 = (jnp.dot(wc_ref[...], acc, preferred_element_type=jnp.float32)
          + jnp.dot(w0_ref[...], x_crop, preferred_element_type=jnp.float32)
          + b_ref[...])

    # clamp_min(0) + clamp_max(6) gate, then v1 * v5 / 6 with the pool's 1/9
    # and the final 1/6 folded into one constant (1/54).
    v5 = jnp.minimum(jnp.maximum(v3, 0.0), 6.0)               # (K, Lpad)
    out_ref[...] = (acc * v5) * (1.0 / 54.0)                  # requires K == C


def fused_forward(x_nchw, w0, b0, wc, bc):
    """x_nchw: (1, C, H, W) f32; w0/wc: (K, C) 1x1-conv weights; b0/bc: (K,).
    Returns (1, 1, 1, K, H-2, W-2), matching the broadcast chain + unsqueezes."""
    n, c, h, w = x_nchw.shape
    assert n == 1
    k = wc.shape[0]
    assert wc.shape == (k, c) and w0.shape == (k, c)
    assert k == c, "v6 = v1 * v5 needs a unified channel count (see TODO)"
    ho, wo = h - 2, w - 2
    L = ho * w

    # Lane-dense output width, and a single input pad that covers both the
    # pooling guard reads (max index Lpad + 2W + 1) and lane alignment.
    Lpad = ((L + 127) // 128) * 128
    x_need = Lpad + 2 * w + 2
    x_pad_len = ((x_need + 127) // 128) * 128

    x_flat = x_nchw.reshape(c, h * w)                         # metadata-only
    x_pad = jnp.pad(x_flat, ((0, 0), (0, x_pad_len - h * w)))  # one pad op

    # Fold the avg-pool 1/9 into the conv weight; sum the biases once.
    wc_s = (wc * (1.0 / 9.0)).astype(jnp.float32)             # (K, C)
    w0_f = w0.astype(jnp.float32)                             # (K, C)
    b_sum = (bc + b0).reshape(k, 1).astype(jnp.float32)       # (K, 1)

    flops = (2 * c * (Lpad + 2 * w)        # horizontal pool sum
             + 2 * c * Lpad                # vertical pool sum
             + 2 * 2 * k * c * Lpad        # two 1x1-conv matmuls
             + 6 * k * Lpad)               # add/bias/clamp/clamp/mul/scale
    bytes_accessed = 4 * (c * x_pad_len + 2 * k * c + k + k * Lpad)

    out_flat = pl.pallas_call(
        functools.partial(_fused_kernel, width=w),
        out_shape=jax.ShapeDtypeStruct((k, Lpad), jnp.float32),
        in_specs=[pl.BlockSpec(memory_space=pltpu.MemorySpace.VMEM)] * 4,
        out_specs=pl.BlockSpec(memory_space=pltpu.MemorySpace.VMEM),
        cost_estimate=pl.CostEstimate(flops=flops, transcendentals=0,
                                      bytes_accessed=bytes_accessed),
    )(x_pad, wc_s, w0_f, b_sum)

    # Drop lane padding + row-wrap garbage columns (j >= Wo): cheap slices.
    out_khw = out_flat[:, :L].reshape(k, ho, w)[:, :, :wo]    # (K, Ho, Wo)
    # v7.unsqueeze chain -> (1, 1, 1, K, Ho, Wo)
    return out_khw[None, None, None]


if __name__ == "__main__":
    C = 8            # unified channel count (see TODO above)
    K = 8
    H = W = 16

    key = jax.random.PRNGKey(0)
    k1, k2, k3, k4, k5 = jax.random.split(key, 5)

    x = jax.random.normal(k1, (1, C, H, W), dtype=jnp.float32)
    # 1x1 conv weights stored PyTorch-style as (C_out, C_in).
    w0 = jax.random.normal(k2, (K, C), dtype=jnp.float32) * 0.1   # conv0
    b0 = jax.random.normal(k3, (K,), dtype=jnp.float32) * 0.1
    wc = jax.random.normal(k4, (K, C), dtype=jnp.float32) * 0.1   # conv
    bc = jax.random.normal(k5, (K,), dtype=jnp.float32) * 0.1

    out = fused_forward(x, w0, b0, wc, bc)
    jax.block_until_ready(out)
    assert out.shape == (1, 1, 1, K, H - 2, W - 2)

    # Pure-JAX reference of the (reinterpreted) forward for a correctness check.
    def _ref(x, w0, b0, wc, bc):
        xc = x[0]
        ho, wo = H - 2, W - 2
        v1 = jnp.zeros((C, ho, wo), jnp.float32)
        for di in range(3):
            for dj in range(3):
                v1 = v1 + xc[:, di:di + ho, dj:dj + wo]
        v1 = v1 / 9.0
        v2 = jnp.einsum("kc,chw->khw", wc, v1) + bc[:, None, None]
        t1 = jnp.einsum("kc,chw->khw", w0, xc[:, 1:1 + ho, 1:1 + wo]) + b0[:, None, None]
        v5 = jnp.clip(v2 + t1, 0.0, 6.0)
        return (v1 * v5 / 6.0)[None, None, None]

    ref = _ref(x, w0, b0, wc, bc)
    assert jnp.allclose(out, ref, rtol=1e-4, atol=1e-4), float(jnp.max(jnp.abs(out - ref)))

    print("KERNEL_OK")
</pallas_src>

<mosaic_0001>
module attributes {stable_mosaic.version = 11 : i64} {
  func.func @_fused_kernel(%arg0: memref<8x384xf32, #tpu.memory_space<vmem>>, %arg1: memref<8x8xf32, #tpu.memory_space<vmem>>, %arg2: memref<8x8xf32, #tpu.memory_space<vmem>>, %arg3: memref<8x1xf32, #tpu.memory_space<vmem>>, %arg4: memref<8x256xf32, #tpu.memory_space<vmem>>) attributes {dimension_semantics = [], scalar_prefetch = 0 : i64, scratch_operands = 0 : i64, tpu.core_type = #tpu.core_type<tc>} {
    %c0 = arith.constant 0 : index
    %c0_0 = arith.constant 0 : index
    %0 = vector.load %arg0[%c0, %c0_0] : memref<8x384xf32, #tpu.memory_space<vmem>>, vector<8x384xf32>
    %1 = vector.extract_strided_slice %0 {offsets = [0, 0], sizes = [8, 288], strides = [1, 1]} : vector<8x384xf32> to vector<8x288xf32>
    %2 = vector.extract_strided_slice %0 {offsets = [0, 1], sizes = [8, 288], strides = [1, 1]} : vector<8x384xf32> to vector<8x288xf32>
    %3 = arith.addf %1, %2 : vector<8x288xf32>
    %4 = vector.extract_strided_slice %0 {offsets = [0, 2], sizes = [8, 288], strides = [1, 1]} : vector<8x384xf32> to vector<8x288xf32>
    %5 = arith.addf %3, %4 : vector<8x288xf32>
    %6 = vector.extract_strided_slice %5 {offsets = [0, 0], sizes = [8, 256], strides = [1, 1]} : vector<8x288xf32> to vector<8x256xf32>
    %7 = vector.extract_strided_slice %5 {offsets = [0, 16], sizes = [8, 256], strides = [1, 1]} : vector<8x288xf32> to vector<8x256xf32>
    %8 = arith.addf %6, %7 : vector<8x256xf32>
    %9 = vector.extract_strided_slice %5 {offsets = [0, 32], sizes = [8, 256], strides = [1, 1]} : vector<8x288xf32> to vector<8x256xf32>
    %10 = arith.addf %8, %9 : vector<8x256xf32>
    %11 = vector.extract_strided_slice %0 {offsets = [0, 17], sizes = [8, 256], strides = [1, 1]} : vector<8x384xf32> to vector<8x256xf32>
    %c0_1 = arith.constant 0 : index
    %c0_2 = arith.constant 0 : index
    %12 = vector.load %arg1[%c0_1, %c0_2] : memref<8x8xf32, #tpu.memory_space<vmem>>, vector<8x8xf32>
    %cst = arith.constant dense<0.000000e+00> : vector<8x256xf32>
    %13 = tpu.matmul %12, %10, %cst {dimension_numbers = #tpu.dot_dimension_numbers<[1], [0], [0], [1], [0, 0, 1, 1], [], []>} : vector<8x8xf32>, vector<8x256xf32>, vector<8x256xf32> -> vector<8x256xf32>
    %c0_3 = arith.constant 0 : index
    %c0_4 = arith.constant 0 : index
    %14 = vector.load %arg2[%c0_3, %c0_4] : memref<8x8xf32, #tpu.memory_space<vmem>>, vector<8x8xf32>
    %cst_5 = arith.constant dense<0.000000e+00> : vector<8x256xf32>
    %15 = tpu.matmul %14, %11, %cst_5 {dimension_numbers = #tpu.dot_dimension_numbers<[1], [0], [0], [1], [0, 0, 1, 1], [], []>} : vector<8x8xf32>, vector<8x256xf32>, vector<8x256xf32> -> vector<8x256xf32>
    %16 = arith.addf %13, %15 : vector<8x256xf32>
    %c0_6 = arith.constant 0 : index
    %c0_7 = arith.constant 0 : index
    %17 = vector.load %arg3[%c0_6, %c0_7] : memref<8x1xf32, #tpu.memory_space<vmem>>, vector<8x1xf32>
    %18 = vector.broadcast %17 : vector<8x1xf32> to vector<8x256xf32>
    %19 = arith.addf %16, %18 : vector<8x256xf32>
    %cst_8 = arith.constant 0.000000e+00 : f32
    %20 = vector.broadcast %cst_8 : f32 to vector<8x256xf32>
    %21 = arith.maximumf %19, %20 : vector<8x256xf32>
    %cst_9 = arith.constant 6.000000e+00 : f32
    %22 = vector.broadcast %cst_9 : f32 to vector<8x256xf32>
    %23 = arith.minimumf %21, %22 : vector<8x256xf32>
    %24 = arith.mulf %10, %23 : vector<8x256xf32>
    %cst_10 = arith.constant 0.0185185187 : f32
    %25 = vector.broadcast %cst_10 : f32 to vector<8x256xf32>
    %26 = arith.mulf %24, %25 : vector<8x256xf32>
    %c0_11 = arith.constant 0 : index
    %c0_12 = arith.constant 0 : index
    %27 = vector.load %arg4[%c0_11, %c0_12] : memref<8x256xf32, #tpu.memory_space<vmem>>, vector<8x256xf32>
    tpu.vector_store %arg4[%c0_11, %c0_12], %26 {strides = array<i32>} : memref<8x256xf32, #tpu.memory_space<vmem>>, vector<8x256xf32>,
    return
  }
}

</mosaic_0001>

<bundles_post_ra>
// kernel: tpu_custom_call.1
= control target key start
LH: loop header
LB: loop body
LE: loop exit
PB: predicated region body
PF: predicated region fallthrough
CT: control target
= control target key end

     0   :  { %9 = vsyncpa [#allocation3], 0  ;;  %s398_s0 = inlined_call_operand.hbm [shape: f32[8,384], index: 0, kind: input, shape index: {}]   ;;  %s399_s1 = inlined_call_operand.vmem [shape: f32[8,8], index: 1, kind: input, shape index: {}]   ;;  %s400_s2 = inlined_call_operand.hbm [shape: f32[8,8], index: 2, kind: input, shape index: {}]   ;;  %s401_s3 = inlined_call_operand.vmem [shape: f32[8,1], index: 3, kind: input, shape index: {}]   ;;  %s402_s4 = inlined_call_operand.hbm [shape: f32[8,256], index: 4, kind: output, shape index: {}]  }
   0x1   :  { %10 = vsyncpa [#allocation6], 0 }
   0x2   :  { %11 = vsyncpa [#allocation4], 0  ;;  %s17_s17 = sshll.u32 %s398_s0, 4  ;;  %s345_s18 = smov [#allocation2]   ;;  %s18_s17 = int_to_ptr.hbm [resolvable:$true] %s17_s17 }
   0x3   :  { %s19_s19 = sshll.u32 %s345_s18, 4  ;;  %s30_s22 = sshll.u32 %s400_s2, 4  ;;  %s20_s19 = int_to_ptr.vmem [resolvable:$true] %s19_s19  ;;  %s31_s22 = int_to_ptr.hbm [resolvable:$true] %s30_s22 }
   0x4   :  { %22 = dma.hbm_to_vmem [thread:$0]  %s18_s17, 384, %s20_s19, [#allocation3]  }
   0x5   :  { %s346_s23 = smov [#allocation5]  }
   0x6   :  { %s32_s24 = sshll.u32 %s346_s23, 4  ;;  %s33_s24 = int_to_ptr.vmem [resolvable:$true] %s32_s24 }
   0x7   :  { %35 = dma.hbm_to_vmem [thread:$0]  %s31_s22, 128, %s33_s24, [#allocation6]  }
   0x8   :  { %339 = dma.done.wait [#allocation3], 384  }
   0x9   :  { %340 = vsyncadd [#allocation3], 4294966912 }
   0xa   :  { %341 = dma.done.wait [#allocation6], 128  }
   0xb   :  { %342 = vsyncadd [#allocation6], 4294967168  ;;  %v48_v0 = vld [vmem:[#allocation2 + $0x10] sm:$0xff]  ;;  %v46_v1 = vld [vmem:[#allocation2] sm:$0xff]  ;;  %s347_s0 = smov 127   ;;  %s348_s25 = smov 126  }
   0xc   :  { %56 = vrot.lane.b32.xlu1 %v48_v0, %s347_s0  ;;  %52 = vrot.lane.b32.xlu0 %v46_v1, %s347_s0  ;;  %v47_v2 = vld [vmem:[#allocation2 + $0x8] sm:$0xff]  ;;  %s349_s2 = smov 112   ;;  %vm58_vm0 = vcmask 1039360   ;;  %vm73_vm1 = vcmask 1031168   ;;  %s350_s26 = smov 96   ;;  %v211_v20 = vld [vmem:[%s401_s3] sm:$0xff] }
   0xd   :  { %69 = vrot.lane.b32.xlu2 %v47_v2, %s348_s25  ;;  %v260_v19 = vpack.i.bf16 %v47_v2, %v46_v1  ;;  %s351_s27 = smov 111   ;;  %v352_v21 = vmov 0   ;;  %vm91_vm2 = vcmask 916480   ;;  %vm104_vm3 = vcmask 785408   ;;  %v111_v36 = vld [vmem:[%s399_s1] sm:$0xff]  ;;  %v112_v41 = vld [vmem:[#allocation5] sm:$0xff] }
   0xe   :  { %265 = vset.pattern.permute.xlu2 %v352_v21  ;;  %266 = vset.pattern.permute.xlu0 %v352_v21  ;;  %vm124_vm4 = vcmask 64512   ;;  %vm119_vm5 = vcmask 908288   ;;  %s353_s1 = smov [#allocation7]   ;;  %s236_s8 = sshll.u32 %s402_s4, 4  ;;  %s237_s8 = int_to_ptr.hbm [resolvable:$true] %s236_s8 }
   0xf   :  { %s234_s5 = sshll.u32 %s353_s1, 4  ;;  %s235_s5 = int_to_ptr.vmem [resolvable:$true] %s234_s5 }
  0x14   :  { %67 = vrot.lane.b32.xlu1 %v46_v1, %s348_s25  ;;  %54 = vrot.lane.b32.xlu0 %v47_v2, %s347_s0 }
  0x15   :  { %71 = vrot.lane.b32.xlu2 %v48_v0, %s348_s25 }
  0x67   :  { %v70_v3 = vpop.permute.xlu2 %69 }
  0x6f   :  { %v72_v4 = vpop.permute.xlu2 %71 }
  0x70   :  { %v75_v15 = vsel %vm73_vm1, %v70_v3, %v72_v4 }
  0x7e   :  { %v57_v5 = vpop.permute.xlu1 %56  ;;  %v53_v6 = vpop.permute.xlu0 %52 }
  0x7f   :  { %v66_v7 = vadd.f32 %v57_v5, %v48_v0 }
  0x81   :  { %v81_v8 = vadd.f32 %v72_v4, %v66_v7 }
  0x83   :  { %89 = vrot.lane.b32.xlu2 %v81_v8, %s349_s2 }
  0x86   :  { %v68_v9 = vpop.permute.xlu1 %67  ;;  %v55_v10 = vpop.permute.xlu0 %54 }
  0x87   :  { %v59_v11 = vsel %vm58_vm0, %v53_v6, %v55_v10  ;;  %v60_v12 = vsel %vm58_vm0, %v55_v10, %v57_v5  ;;  %v74_v16 = vsel %vm73_vm1, %v68_v9, %v70_v3 }
  0x88   :  { %v64_v13 = vadd.f32 %v59_v11, %v46_v1  ;;  %v65_v14 = vadd.f32 %v60_v12, %v47_v2 }
  0x8a   :  { %v80_v17 = vadd.f32 %v75_v15, %v65_v14  ;;  %v79_v18 = vadd.f32 %v74_v16, %v64_v13 }
  0x8b   :  { %102 = vrot.lane.b32.xlu2 %v81_v8, %s350_s26 }
  0x8c   :  { %87 = vrot.lane.b32.xlu1 %v80_v17, %s349_s2  ;;  %85 = vrot.lane.b32.xlu0 %v79_v18, %s349_s2 }
  0x93   :  { %214 = vperm.xlu2 %265, %v211_v20  }
  0x94   :  { %100 = vrot.lane.b32.xlu1 %v80_v17, %s350_s26  ;;  %98 = vrot.lane.b32.xlu0 %v79_v18, %s350_s26 }
  0x9c   :  { %261 = vrot.lane.b32.xlu0 %v260_v19, %s351_s27  ;;  %117 = vrot.lane.b32.xlu1 %v48_v0, %s351_s27 }
  0xdd   :  { %v90_v22 = vpop.permute.xlu2 %89 }
  0xe5   :  { %v103_v27 = vpop.permute.xlu2 %102 }
  0xed   :  { %v215_v46 = vpop.permute.xlu2 %214 }
  0xfe   :  { %v88_v23 = vpop.permute.xlu1 %87  ;;  %v86_v24 = vpop.permute.xlu0 %85 }
  0xff   :  { %v93_v25 = vsel %vm91_vm2, %v88_v23, %v90_v22  ;;  %v92_v26 = vsel %vm91_vm2, %v86_v24, %v88_v23 }
 0x100   :  { %v97_v28 = vadd.f32 %v93_v25, %v80_v17  ;;  %v96_v29 = vadd.f32 %v92_v26, %v79_v18 }
 0x106   :  { %v101_v30 = vpop.permute.xlu1 %100  ;;  %v99_v31 = vpop.permute.xlu0 %98 }
 0x107   :  { %v106_v32 = vsel %vm104_vm3, %v101_v30, %v103_v27  ;;  %v105_v33 = vsel %vm104_vm3, %v99_v31, %v101_v30 }
 0x108   :  { %v109_v34 = vadd.f32 %v105_v33, %v96_v29  ;;  %v110_v35 = vadd.f32 %v106_v32, %v97_v28 }
 0x10a   :  { %186 = vmatpush.msra.mxu2 %v109_v34  ;;  %206 = vmatpush.msra.mxu3 %v110_v35 }
 0x10b   :  { %249 = vmatmul.msk.f32.vlgmr.msra.gmra.mxu2 %vm124_vm4, %v111_v36  ;;  %250 = vmatmul.msk.f32.vlgmr.msra.gmra.mxu3 %vm124_vm4, %v111_v36 }
 0x10e   :  { %v262_v37 = vpop.permute.xlu0 %261  ;;  %v118_v38 = vpop.permute.xlu1 %117 }
 0x10f   :  { %v264_v39 = vunpack.i.h.bf16 %v262_v37  ;;  %v263_v40 = vunpack.i.l.bf16 %v262_v37 }
 0x111   :  { %v120_v42 = vsel %vm119_vm5, %v263_v40, %v264_v39  ;;  %v121_v43 = vsel %vm119_vm5, %v264_v39, %v118_v38 }
 0x112   :  { %143 = vmatpush.msra.mxu0 %v120_v42  ;;  %163 = vmatpush.msra.mxu1 %v121_v43 }
 0x113   :  { %247 = vmatmul.msk.f32.vlgmr.msra.gmra.mxu0 %vm124_vm4, %v112_v41  ;;  %248 = vmatmul.msk.f32.vlgmr.msra.gmra.mxu1 %vm124_vm4, %v112_v41 }
 0x18e   :  { %v188_v44 = vpop.f32.mrf.mxu2  ;;  %v208_v45 = vpop.f32.mrf.mxu3 }
 0x190   :  { %v145_v47 = vpop.f32.mrf.mxu0  ;;  %v165_v48 = vpop.f32.mrf.mxu1 }
 0x191   :  { %v189_v49 = vadd.f32 %v188_v44, %v145_v47  ;;  %v209_v50 = vadd.f32 %v208_v45, %v165_v48 }
 0x193   :  { %v217_v51 = vadd.f32 %v215_v46, %v189_v49  ;;  %v218_v52 = vadd.f32 %v215_v46, %v209_v50 }
 0x195   :  { %v219_v53 = vmax.f32 %v217_v51, 0.0  ;;  %v220_v54 = vmax.f32 %v218_v52, 0.0 }
 0x197   :  { %v221_v55 = vmin.f32 %v219_v53, 6.0  ;;  %v222_v56 = vmin.f32 %v220_v54, 6.0 }
 0x199   :  { %v223_v57 = vmul.f32 %v221_v55, %v109_v34  ;;  %v224_v58 = vmul.f32 %v222_v56, %v110_v35 }
 0x19b   :  { %v225_v59 = vmul.f32 0.018518519, %v223_v57  ;;  %v226_v60 = vmul.f32 0.018518519, %v224_v58 }
 0x19d   :  { %227 = vst [vmem:[#allocation7] sm:$0xff] %v225_v59 }
 0x19e   :  { %228 = vst [vmem:[#allocation7 + $0x8] sm:$0xff] %v226_v60 }
 0x19f   :  { %239 = dma.vmem_to_hbm [thread:$0]  %s235_s5, 256, %s237_s8, [#allocation4]  }
 0x1a0   :  { %343 = dma.done.wait [#allocation4], 256  }
 0x1a1   :  { %344 = vsyncadd [#allocation4], 4294967040 }
 0x1a2   :  { %244 = vsyncpa [#allocation3], 1 }
 0x1a3   :  { %245 = vsyncpa [#allocation6], 1 }
 0x1a4   :  { %246 = vsyncpa [#allocation4], 1 }

</bundles_post_ra>
